<compile_context>
chip_gen: v6e
topology: v6e:2x2x1
jax: 0.10.0
libtpu: 0.0.40
codegen_flags: <defaults>
</compile_context>

<pallas_src>
import jax
import jax.numpy as jnp
from jax.experimental import pallas as pl
from jax.experimental.pallas import tpu as pltpu


def _residual_linear_kernel(x_ref, w_ref, b_ref, o_ref):
    # x_ref: (TILE_M, L)   w_ref: (L, L)   b_ref: (1, L)   o_ref: (TILE_M, L)
    # The residual is already folded into the weight (W' = W + I), so
    # fn(x) + x == x @ W' + b.
    acc = jnp.dot(
        x_ref[...],
        w_ref[...],
        preferred_element_type=jnp.float32,
        precision=jax.lax.Precision.HIGHEST,  # free (mem-bound); f32 parity
    )
    acc = acc + b_ref[...].astype(jnp.float32)
    o_ref[...] = acc.astype(o_ref.dtype)


def residual_add(x, w, b, *, tile_m=2048, force_pallas=False):
    """ResidualAdd(Linear): out = (x @ w + b) + x for x of shape (B, S, H)."""
    B, S, H = x.shape
    M = B * S

    # Tiny problems: a single-grid-step pallas_call is pure launch/pipeline
    # overhead -- let XLA fuse the whole epilogue instead.
    if not force_pallas and M * H <= 4096:
        y = jnp.matmul(x, w, precision=jax.lax.Precision.HIGHEST) + b
        return y + x

    # Fold the residual into the weight:  x @ (W + I) + b == x @ W + b + x.
    w_res = w + jnp.eye(H, dtype=w.dtype)

    # Lane-fold: pack `fold` consecutive rows into one 128-lane row so output
    # stores are full-width vst and the MXU is lane-dense, without inflating
    # x/out HBM traffic via zero padding.
    fold = 128 // H if (H < 128 and 128 % H == 0) else 1
    if fold > 1 and M % fold != 0:
        fold = 1  # ragged row count: fall back to lane width H (still correct)

    if fold > 1:
        L = fold * H                                          # == 128
        xk = x.reshape(M // fold, L)                          # contiguous, free
        wk = jnp.kron(jnp.eye(fold, dtype=w.dtype), w_res)    # block-diag (L, L)
        bk = jnp.tile(b, fold).reshape(1, L)
    else:
        L = H
        xk = x.reshape(M, H)
        wk = w_res
        bk = b.reshape(1, H)

    Mk = xk.shape[0]
    if Mk <= tile_m:
        tile_rows = Mk                          # block == full dim: always legal
    else:
        tile_rows = max(8, (tile_m // 8) * 8)   # keep the (8, 128) block rule
    grid = (pl.cdiv(Mk, tile_rows),)

    x_bytes = jnp.dtype(x.dtype).itemsize
    w_bytes = jnp.dtype(w.dtype).itemsize
    cost = pl.CostEstimate(
        flops=2 * Mk * L * L,
        transcendentals=0,
        bytes_accessed=x_bytes * 2 * Mk * L + w_bytes * (L * L + L),
    )

    out = pl.pallas_call(
        _residual_linear_kernel,
        out_shape=jax.ShapeDtypeStruct((Mk, L), x.dtype),
        grid_spec=pltpu.PrefetchScalarGridSpec(
            num_scalar_prefetch=0,
            grid=grid,
            in_specs=[
                # x tile: pipelined (double-buffered) along the row grid axis.
                pl.BlockSpec((tile_rows, L), lambda i: (i, 0)),
                # Weight / bias: constant index_map -> fetched once and kept
                # resident; Pallas does not re-DMA an unchanged block index.
                pl.BlockSpec((L, L), lambda i: (0, 0)),
                pl.BlockSpec((1, L), lambda i: (0, 0)),
            ],
            out_specs=pl.BlockSpec((tile_rows, L), lambda i: (i, 0)),
        ),
        compiler_params=pltpu.CompilerParams(
            # Independent row tiles.
            dimension_semantics=("parallel",),
        ),
        cost_estimate=cost,
    )(xk, wk, bk)

    return out.reshape(B, S, H)


if __name__ == "__main__":
    key = jax.random.PRNGKey(0)
    kx, kw, kb, kx2 = jax.random.split(key, 4)

    B, S, H = 2, 8, 32
    x = jax.random.normal(kx, (B, S, H), dtype=jnp.float32)
    # Deterministic parameter init for fn = Linear(H, H)
    w = jax.random.normal(kw, (H, H), dtype=jnp.float32) * (1.0 / H**0.5)
    b = jax.random.normal(kb, (H,), dtype=jnp.float32) * 0.01

    run = jax.jit(residual_add, static_argnames=("tile_m", "force_pallas"))

    def ref_fn(xx):
        return (
            jnp.einsum("bsh,hk->bsk", xx, w, precision=jax.lax.Precision.HIGHEST)
            + b
            + xx
        )

    # 1) Module-sized small shape, forced through the Pallas kernel.
    out = jax.block_until_ready(run(x, w, b, force_pallas=True))
    assert out.shape == x.shape
    assert jnp.allclose(out, ref_fn(x), atol=1e-5, rtol=1e-5), "pallas mismatch"

    # 2) Larger shape: multi-tile grid with a ragged tail block (1000 folded
    #    rows, 256-row tiles -> grid of 4 with a 232-row partial tail).
    B2, S2 = 4, 1000
    x2 = jax.random.normal(kx2, (B2, S2, H), dtype=jnp.float32)
    out2 = jax.block_until_ready(run(x2, w, b, tile_m=256))
    assert jnp.allclose(out2, ref_fn(x2), atol=1e-5, rtol=1e-5), "tail mismatch"

    # 3) Tiny-input fallback path (fused XLA, no pallas_call).
    out3 = jax.block_until_ready(run(x, w, b))
    assert jnp.allclose(out3, ref_fn(x), atol=1e-5, rtol=1e-5), "fallback mismatch"

    print("KERNEL_OK")
</pallas_src>

<mosaic_0001>
module attributes {stable_mosaic.version = 11 : i64} {
  func.func @_residual_linear_kernel(%arg0: i32, %arg1: memref<4x128xf32, #tpu.memory_space<vmem>>, %arg2: memref<128x128xf32, #tpu.memory_space<vmem>>, %arg3: memref<1x128xf32, #tpu.memory_space<vmem>>, %arg4: memref<4x128xf32, #tpu.memory_space<vmem>>) attributes {dimension_semantics = [#tpu.dimension_semantics<parallel>], iteration_bounds = array<i64: 1>, scalar_prefetch = 0 : i64, scratch_operands = 0 : i64, tpu.core_type = #tpu.core_type<tc>, window_params = [{transform_indices = @transform_0, window_bounds = array<i64: 4, 128>}, {pipeline_mode = #tpu.pipeline_mode<synchronous>, transform_indices = @transform_1, window_bounds = array<i64: 128, 128>}, {pipeline_mode = #tpu.pipeline_mode<synchronous>, transform_indices = @transform_2, window_bounds = array<i64: 1, 128>}, {transform_indices = @transform_3, window_bounds = array<i64: 4, 128>}]} {
    %c0 = arith.constant 0 : index
    %c0_0 = arith.constant 0 : index
    %0 = vector.load %arg1[%c0, %c0_0] : memref<4x128xf32, #tpu.memory_space<vmem>>, vector<4x128xf32>
    %c0_1 = arith.constant 0 : index
    %c0_2 = arith.constant 0 : index
    %1 = vector.load %arg2[%c0_1, %c0_2] : memref<128x128xf32, #tpu.memory_space<vmem>>, vector<128x128xf32>
    %cst = arith.constant dense<0.000000e+00> : vector<4x128xf32>
    %2 = tpu.matmul %0, %1, %cst {dimension_numbers = #tpu.dot_dimension_numbers<[1], [0], [0], [1], [0, 0, 1, 1], [], []>, precision = #tpu.contract_precision<fp32>} : vector<4x128xf32>, vector<128x128xf32>, vector<4x128xf32> -> vector<4x128xf32>
    %c0_3 = arith.constant 0 : index
    %c0_4 = arith.constant 0 : index
    %3 = vector.load %arg3[%c0_3, %c0_4] : memref<1x128xf32, #tpu.memory_space<vmem>>, vector<1x128xf32>
    %4 = vector.broadcast %3 : vector<1x128xf32> to vector<4x128xf32>
    %5 = arith.addf %2, %4 : vector<4x128xf32>
    %c0_5 = arith.constant 0 : index
    %c0_6 = arith.constant 0 : index
    %6 = vector.load %arg4[%c0_5, %c0_6] : memref<4x128xf32, #tpu.memory_space<vmem>>, vector<4x128xf32>
    tpu.vector_store %arg4[%c0_5, %c0_6], %5 {strides = array<i32>} : memref<4x128xf32, #tpu.memory_space<vmem>>, vector<4x128xf32>,
    return
  }
  func.func @transform_0(%arg0: i32) -> (i32, i32) {
    %c0_i32 = arith.constant 0 : i32
    %c0_i32_0 = arith.constant 0 : i32
    return %arg0, %c0_i32 : i32, i32
  }
  func.func @transform_1(%arg0: i32) -> (i32, i32) {
    %c0_i32 = arith.constant 0 : i32
    %c0_i32_0 = arith.constant 0 : i32
    %c0_i32_1 = arith.constant 0 : i32
    return %c0_i32, %c0_i32_0 : i32, i32
  }
  func.func @transform_2(%arg0: i32) -> (i32, i32) {
    %c0_i32 = arith.constant 0 : i32
    %c0_i32_0 = arith.constant 0 : i32
    %c0_i32_1 = arith.constant 0 : i32
    return %c0_i32, %c0_i32_0 : i32, i32
  }
  func.func @transform_3(%arg0: i32) -> (i32, i32) {
    %c0_i32 = arith.constant 0 : i32
    %c0_i32_0 = arith.constant 0 : i32
    return %arg0, %c0_i32 : i32, i32
  }
}

</mosaic_0001>

<bundles_post_ra>
// kernel: tile.9
= control target key start
LH: loop header
LB: loop body
LE: loop exit
PB: predicated region body
PF: predicated region fallthrough
CT: control target
= control target key end

     0   :  { %vm8_vm0 = vcmask 261120   ;;  %s40_s8 = smov 32   ;;  %s41_s9 = smov 64   ;;  %vm14_vm1 = vcmask 1048320   ;;  %vm20_vm2 = vcmask 785920   ;;  %vm26_vm3 = vcmask 523520   ;;  %s58_s0 = inlined_call_operand.vmem [shape: f32[4,32], index: 0, kind: input, shape index: {}]   ;;  %s59_s1 = inlined_call_operand.vmem [shape: f32[1,128], index: 1, kind: output, shape index: {}]  }
   0x1   :  { %v5_v0 = vld [vmem:[%s58_s0] sm:$0xf]  ;;  %s39_s0 = smov 96  }
   0x2   :  { %6 = vst [vmem:[#allocation1] sm:$0xf] %v5_v0 }
   0x9   :  { %v11_v1 = vld [vmem:[#allocation1 + $0x3] sm:$0x1]   ;;  %v23_v2 = vld [vmem:[#allocation1 + $0x1] sm:$0x1]   ;;  %v7_v3 = vld [vmem:[#allocation1] sm:$0x1]  }
   0xa   :  { %12 = vrot.lane.b32.xlu0 %v11_v1, %s39_s0  ;;  %24 = vrot.lane.b32.xlu1 %v23_v2, %s40_s8  ;;  %v17_v4 = vld [vmem:[#allocation1 + $0x2] sm:$0x1]   ;;  %9 = vst.msk [vmem:[#allocation0] sm:$0x1] %vm8_vm0, %v7_v3  }
   0xe   :  { %18 = vrot.lane.b32.xlu0 %v17_v4, %s41_s9 }
  0x7c   :  { %v13_v5 = vpop.permute.xlu0 %12   ;;  %v25_v6 = vpop.permute.xlu1 %24  }
  0x7d   :  { %15 = vst.msk [vmem:[#allocation0] sm:$0x1] %vm14_vm1, %v13_v5  }
  0x80   :  { %v19_v7 = vpop.permute.xlu0 %18  }
  0x81   :  { %21 = vst.msk [vmem:[#allocation0] sm:$0x1] %vm20_vm2, %v19_v7  }
  0x82   :  { %27 = vst.msk [vmem:[#allocation0] sm:$0x1] %vm26_vm3, %v25_v6  }
  0x89   :  { %v32_v8 = vld [vmem:[#allocation0] sm:$0x1] }
  0x8a   :  { %35 = vst [vmem:[%s59_s1] sm:$0x1] %v32_v8 }

// kernel: tile.8
= control target key start
LH: loop header
LB: loop body
LE: loop exit
PB: predicated region body
PF: predicated region fallthrough
CT: control target
= control target key end

     0   :  { %s22_s0 = inlined_call_operand.vmem [shape: f32[32], index: 0, kind: input, shape index: {}]   ;;  %s23_s1 = inlined_call_operand.vmem [shape: f32[4,32], index: 1, kind: output, shape index: {}]  }
   0x1   :  { %v4_v0 = vld [vmem:[%s22_s0] ss:$0 sm:$0xff] }
   0x2   :  { %5 = vst [vmem:[%s23_s1] sm:$0xf] %v4_v0 }

// kernel: residual_add.1
= control target key start
LH: loop header
LB: loop body
LE: loop exit
PB: predicated region body
PF: predicated region fallthrough
CT: control target
= control target key end

     0   :  { %v999_v0 = vmov 0.0   ;;  %vm1000_vm0 = vmmov 0   ;;  %s1441_s1 = inlined_call_operand.vmem [shape: f32[128,128], index: 1, kind: input, shape index: {}]   ;;  %s1442_s0 = inlined_call_operand.vmem [shape: f32[4,128], index: 0, kind: input, shape index: {}]   ;;  %s1443_s2 = inlined_call_operand.vmem [shape: f32[1,128], index: 2, kind: input, shape index: {}]   ;;  %s1444_s3 = inlined_call_operand.vmem [shape: f32[4,128], index: 3, kind: output, shape index: {}]  }
   0x1   :  { %787 = vmatprep.subr.mxu0 %v999_v0  ;;  %v30_v1 = vld [vmem:[%s1441_s1 + $0x78] sm:$0xff]  ;;  %v29_v2 = vld [vmem:[%s1441_s1 + $0x70] sm:$0xff]  ;;  %v28_v3 = vld [vmem:[%s1441_s1 + $0x68] sm:$0xff]  ;;  %822 = vmatprep.subr.mxu1 %v999_v0 }
   0x2   :  { %v1032_v4 = vand.u32 4294901760, %v30_v1  ;;  %v1034_v5 = vand.u32 4294901760, %v29_v2  ;;  %v1036_v6 = vand.u32 4294901760, %v28_v3  ;;  %v27_v7 = vld [vmem:[%s1441_s1 + $0x60] sm:$0xff]  ;;  %v26_v8 = vld [vmem:[%s1441_s1 + $0x58] sm:$0xff]  ;;  %v25_v9 = vld [vmem:[%s1441_s1 + $0x50] sm:$0xff]  ;;  %819 = vmatprep.mubr.msk.f32.mxu0 %vm1000_vm0, %v999_v0  ;;  %854 = vmatprep.mubr.msk.f32.mxu1 %vm1000_vm0, %v999_v0 }
   0x3   :  { %v1051_v10 = vand.u32 4294901760, %v27_v7  ;;  %v1053_v11 = vand.u32 4294901760, %v26_v8  ;;  %v1055_v12 = vand.u32 4294901760, %v25_v9  ;;  %v24_v13 = vld [vmem:[%s1441_s1 + $0x48] sm:$0xff]  ;;  %v23_v14 = vld [vmem:[%s1441_s1 + $0x40] sm:$0xff]  ;;  %v22_v19 = vld [vmem:[%s1441_s1 + $0x38] sm:$0xff] }
   0x4   :  { %788 = vmatpush3.msra.mxu0 %v1032_v4  ;;  %v1065_v15 = vsub.f32 %v30_v1, %v1032_v4  ;;  %v1068_v16 = vsub.f32 %v29_v2, %v1034_v5  ;;  %v1070_v17 = vand.u32 4294901760, %v24_v13  ;;  %v1073_v18 = vsub.f32 %v28_v3, %v1036_v6  ;;  %v21_v26 = vld [vmem:[%s1441_s1 + $0x30] sm:$0xff]  ;;  %v20_v36 = vld [vmem:[%s1441_s1 + $0x28] sm:$0xff]  ;;  %v19_v41 = vld [vmem:[%s1441_s1 + $0x20] sm:$0xff] }
   0x5   :  { %789 = vmatprep.subr.mxu0 %v999_v0  ;;  %v1080_v20 = vsub.f32 %v27_v7, %v1051_v10  ;;  %v1083_v21 = vsub.f32 %v26_v8, %v1053_v11  ;;  %v1089_v25 = vand.u32 4294901760, %v23_v14  ;;  %v1096_v28 = vand.u32 4294901760, %v22_v19  ;;  %v18_v49 = vld [vmem:[%s1441_s1 + $0x18] sm:$0xff]  ;;  %v14_v50 = vld [vmem:[%s1442_s0] sm:$0xf]  ;;  %v17_v54 = vld [vmem:[%s1441_s1 + $0x10] sm:$0xff] }
   0x6   :  { %790 = vmatpush3.msra.mxu0 %v1034_v5  ;;  %v132_v22 = vand.u32 4294901760, %v1065_v15  ;;  %v139_v23 = vand.u32 4294901760, %v1068_v16  ;;  %v146_v24 = vand.u32 4294901760, %v1073_v18  ;;  %v1100_v30 = vsub.f32 %v25_v9, %v1055_v12  ;;  %v16_v60 = vld [vmem:[%s1441_s1 + $0x8] sm:$0xff]  ;;  %v15_v7 = vld [vmem:[%s1441_s1] sm:$0xff] }
   0x7   :  { %791 = vmatprep.subr.mxu0 %v999_v0  ;;  %v153_v27 = vand.u32 4294901760, %v1080_v20  ;;  %v160_v29 = vand.u32 4294901760, %v1083_v21  ;;  %v1113_v34 = vsub.f32 %v24_v13, %v1070_v17  ;;  %v1116_v35 = vand.u32 4294901760, %v21_v26 }
   0x8   :  { %792 = vmatpush3.msra.mxu0 %v1036_v6  ;;  %v133_v31 = vsub.f32 %v1065_v15, %v132_v22  ;;  %v140_v32 = vsub.f32 %v1068_v16, %v139_v23  ;;  %v147_v33 = vsub.f32 %v1073_v18, %v146_v24  ;;  %v167_v40 = vand.u32 4294901760, %v1100_v30 }
   0x9   :  { %793 = vmatprep.subr.mxu0 %v999_v0  ;;  %v154_v39 = vsub.f32 %v1080_v20, %v153_v27  ;;  %v161_v42 = vsub.f32 %v1083_v21, %v160_v29  ;;  %v1134_v43 = vsub.f32 %v23_v14, %v1089_v25  ;;  %v1137_v45 = vand.u32 4294901760, %v20_v36 }
   0xa   :  { %794 = vmatpush3.msra.mxu0 %v1051_v10  ;;  %v134_v37 = vand.u32 4294901760, %v133_v31  ;;  %v141_v38 = vand.u32 4294901760, %v140_v32  ;;  %v148_v44 = vand.u32 4294901760, %v147_v33  ;;  %v174_v46 = vand.u32 4294901760, %v1113_v34 }
   0xb   :  { %795 = vmatprep.subr.mxu0 %v999_v0  ;;  %v1141_v47 = vsub.f32 %v22_v19, %v1096_v28  ;;  %v1145_v48 = vand.u32 4294901760, %v19_v41  ;;  %v155_v51 = vand.u32 4294901760, %v154_v39  ;;  %v168_v52 = vsub.f32 %v1100_v30, %v167_v40 }
   0xc   :  { %796 = vmatpush3.msra.mxu0 %v1053_v11  ;;  %823 = vmatpush3.msra.mxu1 %v134_v37  ;;  %v181_v53 = vand.u32 4294901760, %v1134_v43  ;;  %v1162_v55 = vsub.f32 %v21_v26, %v1116_v35  ;;  %v162_v56 = vand.u32 4294901760, %v161_v42  ;;  %v175_v58 = vsub.f32 %v1113_v34, %v174_v46 }
   0xd   :  { %797 = vmatprep.subr.mxu0 %v999_v0  ;;  %824 = vmatprep.subr.mxu1 %v999_v0  ;;  %v188_v57 = vand.u32 4294901760, %v1141_v47  ;;  %v1171_v59 = vand.u32 4294901760, %v18_v49  ;;  %v1177_v61 = vsub.f32 %v20_v36, %v1137_v45  ;;  %v1179_v62 = vand.u32 4294901760, %v14_v50 }
   0xe   :  { %798 = vmatpush3.msra.mxu0 %v1055_v12  ;;  %825 = vmatpush3.msra.mxu1 %v141_v38  ;;  %v1183_v63 = vand.u32 4294901760, %v17_v54  ;;  %v169_v1 = vand.u32 4294901760, %v168_v52  ;;  %v182_v2 = vsub.f32 %v1134_v43, %v181_v53  ;;  %v195_v3 = vand.u32 4294901760, %v1162_v55 }
   0xf   :  { %799 = vmatprep.subr.mxu0 %v999_v0  ;;  %826 = vmatprep.subr.mxu1 %v999_v0  ;;  %v1194_v8 = vsub.f32 %v19_v41, %v1145_v48  ;;  %v189_v9 = vsub.f32 %v1141_v47, %v188_v57  ;;  %v1201_v13 = vand.u32 4294901760, %v16_v60  ;;  %v176_v14 = vand.u32 4294901760, %v175_v58 }
  0x10   :  { %800 = vmatpush3.msra.mxu0 %v1070_v17  ;;  %827 = vmatpush3.msra.mxu1 %v148_v44  ;;  %v202_v19 = vand.u32 4294901760, %v1177_v61  ;;  %v1206_v26 = vsub.f32 %v14_v50, %v1179_v62  ;;  %v1209_v31 = vsub.f32 %v18_v49, %v1171_v59  ;;  %v1213_v32 = vand.u32 4294901760, %v15_v7 }
  0x11   :  { %801 = vmatprep.subr.mxu0 %v999_v0  ;;  %828 = vmatprep.subr.mxu1 %v999_v0  ;;  %v183_v33 = vand.u32 4294901760, %v182_v2  ;;  %v196_v36 = vsub.f32 %v1162_v55, %v195_v3  ;;  %v209_v37 = vand.u32 4294901760, %v1194_v8  ;;  %v1221_v38 = vsub.f32 %v17_v54, %v1183_v63 }
  0x12   :  { %802 = vmatpush3.msra.mxu0 %v1089_v25  ;;  %829 = vmatpush3.msra.mxu1 %v155_v51  ;;  %v190_v39 = vand.u32 4294901760, %v189_v9  ;;  %v203_v41 = vsub.f32 %v1177_v61, %v202_v19  ;;  %v121_v42 = vand.u32 4294901760, %v1206_v26  ;;  %v216_v44 = vand.u32 4294901760, %v1209_v31 }
  0x13   :  { %803 = vmatprep.subr.mxu0 %v999_v0  ;;  %830 = vmatprep.subr.mxu1 %v999_v0  ;;  %v1232_v49 = vsub.f32 %v16_v60, %v1201_v13  ;;  %v197_v50 = vand.u32 4294901760, %v196_v36  ;;  %v210_v51 = vsub.f32 %v1194_v8, %v209_v37  ;;  %v223_v52 = vand.u32 4294901760, %v1221_v38 }
  0x14   :  { %804 = vmatpush3.msra.mxu0 %v1096_v28  ;;  %831 = vmatpush3.msra.mxu1 %v162_v56  ;;  %v1242_v54 = vsub.f32 %v15_v7, %v1213_v32  ;;  %v204_v56 = vand.u32 4294901760, %v203_v41  ;;  %v122_v58 = vsub.f32 %v1206_v26, %v121_v42  ;;  %v217_v60 = vsub.f32 %v1209_v31, %v216_v44 }
  0x15   :  { %805 = vmatprep.subr.mxu0 %v999_v0  ;;  %832 = vmatprep.subr.mxu1 %v999_v0  ;;  %v211_v2 = vand.u32 4294901760, %v210_v51  ;;  %v224_v7 = vsub.f32 %v1221_v38, %v223_v52 }
  0x16   :  { %806 = vmatpush3.msra.mxu0 %v1116_v35  ;;  %833 = vmatpush3.msra.mxu1 %v169_v1  ;;  %v230_v1 = vand.u32 4294901760, %v1232_v49  ;;  %v237_v9 = vand.u32 4294901760, %v1242_v54 }
  0x17   :  { %807 = vmatprep.subr.mxu0 %v999_v0  ;;  %834 = vmatprep.subr.mxu1 %v999_v0 }
  0x18   :  { %808 = vmatpush3.msra.mxu0 %v1137_v45  ;;  %835 = vmatpush3.msra.mxu1 %v176_v14  ;;  %v123_v14 = vand.u32 4294901760, %v122_v58  ;;  %v231_v36 = vsub.f32 %v1232_v49, %v230_v1  ;;  %v238_v41 = vsub.f32 %v1242_v54, %v237_v9 }
  0x19   :  { %809 = vmatprep.subr.mxu0 %v999_v0  ;;  %836 = vmatprep.subr.mxu1 %v999_v0 }
  0x1a   :  { %810 = vmatpush3.msra.mxu0 %v1145_v48  ;;  %837 = vmatpush3.msra.mxu1 %v183_v33  ;;  %v218_v33 = vand.u32 4294901760, %v217_v60  ;;  %v239_v51 = vand.u32 4294901760, %v238_v41 }
  0x1b   :  { %811 = vmatprep.subr.mxu0 %v999_v0  ;;  %838 = vmatprep.subr.mxu1 %v999_v0 }
  0x1c   :  { %812 = vmatpush3.msra.mxu0 %v1171_v59  ;;  %839 = vmatpush3.msra.mxu1 %v190_v39  ;;  %v225_v39 = vand.u32 4294901760, %v224_v7 }
  0x1d   :  { %813 = vmatprep.subr.mxu0 %v999_v0  ;;  %840 = vmatprep.subr.mxu1 %v999_v0 }
  0x1e   :  { %814 = vmatpush3.msra.mxu0 %v1183_v63  ;;  %841 = vmatpush3.msra.mxu1 %v197_v50  ;;  %v232_v50 = vand.u32 4294901760, %v231_v36 }
  0x1f   :  { %815 = vmatprep.subr.mxu0 %v999_v0  ;;  %842 = vmatprep.subr.mxu1 %v999_v0 }
  0x20   :  { %816 = vmatpush3.msra.mxu0 %v1201_v13  ;;  %843 = vmatpush3.msra.mxu1 %v204_v56 }
  0x21   :  { %817 = vmatprep.subr.mxu0 %v999_v0  ;;  %844 = vmatprep.subr.mxu1 %v999_v0 }
  0x22   :  { %818 = vmatpush3.msra.mxu0 %v1213_v32  ;;  %845 = vmatpush3.msra.mxu1 %v211_v2 }
  0x23   :  { %846 = vmatprep.subr.mxu1 %v999_v0  ;;  %857 = vmatprep.subr.mxu0 %v999_v0 }
  0x24   :  { %820 = vmatmul.mubr.f32.vlgmr.msra.gmra.mxu0 %v123_v14  ;;  %847 = vmatpush3.msra.mxu1 %v218_v33 }
  0x25   :  { %858 = vmatpush3.msra.mxu0 %v1065_v15  ;;  %848 = vmatprep.subr.mxu1 %v999_v0 }
  0x26   :  { %859 = vmatprep.subr.mxu0 %v999_v0  ;;  %849 = vmatpush3.msra.mxu1 %v225_v39 }
  0x27   :  { %860 = vmatpush3.msra.mxu0 %v1068_v16  ;;  %850 = vmatprep.subr.mxu1 %v999_v0 }
  0x28   :  { %861 = vmatprep.subr.mxu0 %v999_v0  ;;  %851 = vmatpush3.msra.mxu1 %v232_v50 }
  0x29   :  { %862 = vmatpush3.msra.mxu0 %v1073_v18  ;;  %852 = vmatprep.subr.mxu1 %v999_v0 }
  0x2a   :  { %863 = vmatprep.subr.mxu0 %v999_v0  ;;  %853 = vmatpush3.msra.mxu1 %v239_v51 }
  0x2b   :  { %864 = vmatpush3.msra.mxu0 %v1080_v20  ;;  %855 = vmatmul.mubr.f32.vlgmr.msra.gmra.mxu1 %v1179_v62 }
  0x2c   :  { %865 = vmatprep.subr.mxu0 %v999_v0  ;;  %892 = vmatprep.subr.mxu1 %v999_v0 }
  0x2d   :  { %866 = vmatpush3.msra.mxu0 %v1083_v21  ;;  %893 = vmatpush3.msra.mxu1 %v1032_v4 }
  0x2e   :  { %867 = vmatprep.subr.mxu0 %v999_v0  ;;  %894 = vmatprep.subr.mxu1 %v999_v0 }
  0x2f   :  { %868 = vmatpush3.msra.mxu0 %v1100_v30  ;;  %895 = vmatpush3.msra.mxu1 %v1034_v5 }
  0x30   :  { %869 = vmatprep.subr.mxu0 %v999_v0  ;;  %896 = vmatprep.subr.mxu1 %v999_v0 }
  0x31   :  { %870 = vmatpush3.msra.mxu0 %v1113_v34  ;;  %897 = vmatpush3.msra.mxu1 %v1036_v6 }
  0x32   :  { %871 = vmatprep.subr.mxu0 %v999_v0  ;;  %898 = vmatprep.subr.mxu1 %v999_v0 }
  0x33   :  { %872 = vmatpush3.msra.mxu0 %v1134_v43  ;;  %899 = vmatpush3.msra.mxu1 %v1051_v10 }
  0x34   :  { %873 = vmatprep.subr.mxu0 %v999_v0  ;;  %900 = vmatprep.subr.mxu1 %v999_v0 }
  0x35   :  { %874 = vmatpush3.msra.mxu0 %v1141_v47  ;;  %901 = vmatpush3.msra.mxu1 %v1053_v11 }
  0x36   :  { %875 = vmatprep.subr.mxu0 %v999_v0  ;;  %902 = vmatprep.subr.mxu1 %v999_v0 }
  0x37   :  { %876 = vmatpush3.msra.mxu0 %v1162_v55  ;;  %903 = vmatpush3.msra.mxu1 %v1055_v12 }
  0x38   :  { %877 = vmatprep.subr.mxu0 %v999_v0  ;;  %904 = vmatprep.subr.mxu1 %v999_v0 }
  0x39   :  { %878 = vmatpush3.msra.mxu0 %v1177_v61  ;;  %905 = vmatpush3.msra.mxu1 %v1070_v17 }
  0x3a   :  { %879 = vmatprep.subr.mxu0 %v999_v0  ;;  %906 = vmatprep.subr.mxu1 %v999_v0 }
  0x3b   :  { %880 = vmatpush3.msra.mxu0 %v1194_v8  ;;  %907 = vmatpush3.msra.mxu1 %v1089_v25 }
  0x3c   :  { %881 = vmatprep.subr.mxu0 %v999_v0  ;;  %908 = vmatprep.subr.mxu1 %v999_v0 }
  0x3d   :  { %882 = vmatpush3.msra.mxu0 %v1209_v31  ;;  %909 = vmatpush3.msra.mxu1 %v1096_v28 }
  0x3e   :  { %883 = vmatprep.subr.mxu0 %v999_v0  ;;  %910 = vmatprep.subr.mxu1 %v999_v0 }
  0x3f   :  { %884 = vmatpush3.msra.mxu0 %v1221_v38  ;;  %911 = vmatpush3.msra.mxu1 %v1116_v35 }
  0x40   :  { %885 = vmatprep.subr.mxu0 %v999_v0  ;;  %912 = vmatprep.subr.mxu1 %v999_v0 }
  0x41   :  { %886 = vmatpush3.msra.mxu0 %v1232_v49  ;;  %913 = vmatpush3.msra.mxu1 %v1137_v45 }
  0x42   :  { %887 = vmatprep.subr.mxu0 %v999_v0  ;;  %914 = vmatprep.subr.mxu1 %v999_v0 }
  0x43   :  { %888 = vmatpush3.msra.mxu0 %v1242_v54  ;;  %889 = vmatprep.mubr.msk.f32.mxu0 %vm1000_vm0, %v999_v0 }
  0x44   :  { %915 = vmatpush3.msra.mxu1 %v1145_v48  ;;  %890 = vmatmul.mubr.f32.vlgmr.msra.gmra.mxu0 %v1206_v26 }
  0x45   :  { %916 = vmatprep.subr.mxu1 %v999_v0  ;;  %927 = vmatprep.subr.mxu0 %v999_v0 }
  0x46   :  { %917 = vmatpush3.msra.mxu1 %v1171_v59  ;;  %928 = vmatpush3.msra.mxu0 %v132_v22 }
  0x47   :  { %918 = vmatprep.subr.mxu1 %v999_v0  ;;  %929 = vmatprep.subr.mxu0 %v999_v0 }
  0x48   :  { %919 = vmatpush3.msra.mxu1 %v1183_v63  ;;  %930 = vmatpush3.msra.mxu0 %v139_v23 }
  0x49   :  { %920 = vmatprep.subr.mxu1 %v999_v0  ;;  %931 = vmatprep.subr.mxu0 %v999_v0 }
  0x4a   :  { %921 = vmatpush3.msra.mxu1 %v1201_v13  ;;  %932 = vmatpush3.msra.mxu0 %v146_v24 }
  0x4b   :  { %922 = vmatprep.subr.mxu1 %v999_v0  ;;  %933 = vmatprep.subr.mxu0 %v999_v0 }
  0x4c   :  { %923 = vmatpush3.msra.mxu1 %v1213_v32  ;;  %924 = vmatprep.mubr.msk.f32.mxu1 %vm1000_vm0, %v999_v0 }
  0x4d   :  { %934 = vmatpush3.msra.mxu0 %v153_v27  ;;  %925 = vmatmul.mubr.f32.vlgmr.msra.gmra.mxu1 %v121_v42 }
  0x4e   :  { %935 = vmatprep.subr.mxu0 %v999_v0  ;;  %962 = vmatprep.subr.mxu1 %v999_v0 }
  0x4f   :  { %936 = vmatpush3.msra.mxu0 %v160_v29  ;;  %963 = vmatpush3.msra.mxu1 %v1032_v4 }
  0x50   :  { %937 = vmatprep.subr.mxu0 %v999_v0  ;;  %964 = vmatprep.subr.mxu1 %v999_v0 }
  0x51   :  { %938 = vmatpush3.msra.mxu0 %v167_v40  ;;  %965 = vmatpush3.msra.mxu1 %v1034_v5 }
  0x52   :  { %939 = vmatprep.subr.mxu0 %v999_v0  ;;  %966 = vmatprep.subr.mxu1 %v999_v0 }
  0x53   :  { %940 = vmatpush3.msra.mxu0 %v174_v46  ;;  %967 = vmatpush3.msra.mxu1 %v1036_v6 }
  0x54   :  { %941 = vmatprep.subr.mxu0 %v999_v0  ;;  %968 = vmatprep.subr.mxu1 %v999_v0 }
  0x55   :  { %942 = vmatpush3.msra.mxu0 %v181_v53  ;;  %969 = vmatpush3.msra.mxu1 %v1051_v10 }
  0x56   :  { %943 = vmatprep.subr.mxu0 %v999_v0  ;;  %970 = vmatprep.subr.mxu1 %v999_v0 }
  0x57   :  { %944 = vmatpush3.msra.mxu0 %v188_v57  ;;  %971 = vmatpush3.msra.mxu1 %v1053_v11 }
  0x58   :  { %945 = vmatprep.subr.mxu0 %v999_v0  ;;  %972 = vmatprep.subr.mxu1 %v999_v0 }
  0x59   :  { %946 = vmatpush3.msra.mxu0 %v195_v3  ;;  %973 = vmatpush3.msra.mxu1 %v1055_v12 }
  0x5a   :  { %947 = vmatprep.subr.mxu0 %v999_v0  ;;  %974 = vmatprep.subr.mxu1 %v999_v0 }
  0x5b   :  { %948 = vmatpush3.msra.mxu0 %v202_v19  ;;  %975 = vmatpush3.msra.mxu1 %v1070_v17  ;;  %v684_v17 = vld [vmem:[%s1443_s2] ss:$0 sm:$0xff] }
  0x5c   :  { %949 = vmatprep.subr.mxu0 %v999_v0  ;;  %976 = vmatprep.subr.mxu1 %v999_v0 }
  0x5d   :  { %950 = vmatpush3.msra.mxu0 %v209_v37  ;;  %977 = vmatpush3.msra.mxu1 %v1089_v25 }
  0x5e   :  { %951 = vmatprep.subr.mxu0 %v999_v0  ;;  %978 = vmatprep.subr.mxu1 %v999_v0 }
  0x5f   :  { %952 = vmatpush3.msra.mxu0 %v216_v44  ;;  %979 = vmatpush3.msra.mxu1 %v1096_v28 }
  0x60   :  { %953 = vmatprep.subr.mxu0 %v999_v0  ;;  %980 = vmatprep.subr.mxu1 %v999_v0 }
  0x61   :  { %954 = vmatpush3.msra.mxu0 %v223_v52  ;;  %981 = vmatpush3.msra.mxu1 %v1116_v35 }
  0x62   :  { %955 = vmatprep.subr.mxu0 %v999_v0  ;;  %982 = vmatprep.subr.mxu1 %v999_v0 }
  0x63   :  { %956 = vmatpush3.msra.mxu0 %v230_v1  ;;  %983 = vmatpush3.msra.mxu1 %v1137_v45 }
  0x64   :  { %957 = vmatprep.subr.mxu0 %v999_v0  ;;  %984 = vmatprep.subr.mxu1 %v999_v0 }
  0x65   :  { %958 = vmatpush3.msra.mxu0 %v237_v9  ;;  %959 = vmatprep.mubr.msk.f32.mxu0 %vm1000_vm0, %v999_v0 }
  0x66   :  { %985 = vmatpush3.msra.mxu1 %v1145_v48  ;;  %960 = vmatmul.mubr.f32.vlgmr.msra.gmra.mxu0 %v1179_v62 }
  0x67   :  { %986 = vmatprep.subr.mxu1 %v999_v0  ;;  %994 = vmatprep.mubr.msk.f32.mxu1 %vm1000_vm0, %v999_v0 }
  0x68   :  { %987 = vmatpush3.msra.mxu1 %v1171_v59 }
  0x69   :  { %988 = vmatprep.subr.mxu1 %v999_v0 }
  0x6a   :  { %989 = vmatpush3.msra.mxu1 %v1183_v63 }
  0x6b   :  { %990 = vmatprep.subr.mxu1 %v999_v0 }
  0x6c   :  { %991 = vmatpush3.msra.mxu1 %v1201_v13 }
  0x6d   :  { %992 = vmatprep.subr.mxu1 %v999_v0 }
  0x6e   :  { %993 = vmatpush3.msra.mxu1 %v1213_v32 }
  0x6f   :  { %995 = vmatmul.mubr.f32.vlgmr.msra.gmra.mxu1 %v1179_v62 }
  0xe4   :  { %v125_v4 = vpop.f32.mrf.mxu0 }
  0xe5   :  { %v126_v18 = vadd.f32 %v684_v17, %v125_v4 }
  0xe6   :  { %v821_v5 = vpop.f32.mrf.mxu0 }
  0xeb   :  { %v276_v6 = vpop.f32.mrf.mxu1 }
  0xec   :  { %v277_v21 = vadd.f32 %v276_v6, %v126_v18 }
  0xed   :  { %v856_v10 = vpop.f32.mrf.mxu1 }
 0x104   :  { %v380_v11 = vpop.f32.mrf.mxu0 }
 0x105   :  { %v381_v22 = vadd.f32 %v380_v11, %v277_v21 }
 0x106   :  { %v891_v12 = vpop.f32.mrf.mxu0 }
 0x10d   :  { %v469_v15 = vpop.f32.mrf.mxu1 }
 0x10e   :  { %v470_v23 = vadd.f32 %v469_v15, %v381_v22 }
 0x10f   :  { %v926_v16 = vpop.f32.mrf.mxu1 }
 0x126   :  { %v588_v20 = vpop.f32.mrf.mxu0 }
 0x127   :  { %v589_v24 = vadd.f32 %v588_v20, %v470_v23 }
 0x128   :  { %v961_v0 = vpop.f32.mrf.mxu0 }
 0x12f   :  { %v675_v25 = vpop.f32.mrf.mxu1 }
 0x130   :  { %v676_v27 = vadd.f32 %v675_v25, %v589_v24 }
 0x131   :  { %v996_v28 = vpop.f32.mrf.mxu1 }
 0x132   :  { %679 = vst [vmem:[%s1444_s3] sm:$0xf] %v676_v27 }

</bundles_post_ra>
